<compile_context>
chip_gen: v7x
topology: tpu7x:2x2x1
jax: 0.10.0
libtpu: 0.0.40
codegen_flags: <defaults>
</compile_context>

<pallas_src>
import jax
import jax.numpy as jnp
from jax.experimental import pallas as pl
from jax.experimental.pallas import tpu as pltpu

EPS = 1e-5
LANE = 128


# --------------------- conv (+ fused BN statistics) kernel ------------------
def _conv_stats_kernel(xt_ref, w_ref, o_ref, st_ref):
    # xt_ref: (1, T, K)    K = 9*Cin, im2col taps for T spatial positions
    # w_ref : (K, CP)      CP = Cout padded to the 128-lane width
    # o_ref : (1, T, CP)   lane-dense conv output tile
    # st_ref: (1, 2, CP)   per-grid-step partial [sum, sum_of_squares]
    y = jnp.dot(xt_ref[0], w_ref[...], preferred_element_type=jnp.float32)
    o_ref[0] = y
    s = jnp.sum(y, axis=0, keepdims=True)
    ss = jnp.sum(y * y, axis=0, keepdims=True)
    st_ref[0] = jnp.concatenate([s, ss], axis=0)


def conv3x3_stats(x, w, *, tile_hw=128):
    """x: (N,H,W,Cin) f32, w: (3,3,Cin,Cout) HWIO.

    Returns (y, ch_sum, ch_sumsq) where y: (N, HW, CP) with CP = Cout padded to
    128 lanes, and ch_sum/ch_sumsq are per-channel batch sums over N*HW."""
    n, h, wd, cin = x.shape
    cout = w.shape[-1]
    hw = h * wd
    k = 9 * cin
    cp = ((cout + LANE - 1) // LANE) * LANE
    t = tile_hw if hw % tile_hw == 0 else hw
    nj = hw // t

    # im2col glue in plain JAX: 9 shifted views concatenated along channels,
    # ordered (kh, kw, cin) to match the row-major reshape of the HWIO weight.
    xp = jnp.pad(x, ((0, 0), (1, 1), (1, 1), (0, 0)))
    taps = [xp[:, kh:kh + h, kw:kw + wd, :].reshape(n, hw, cin)
            for kh in range(3) for kw in range(3)]
    x_taps = jnp.concatenate(taps, axis=-1)                  # (N, HW, 9*Cin)

    wf = jnp.pad(w.reshape(k, cout), ((0, 0), (0, cp - cout)))   # (K, CP)

    y, part = pl.pallas_call(
        _conv_stats_kernel,
        out_shape=(jax.ShapeDtypeStruct((n, hw, cp), jnp.float32),
                   jax.ShapeDtypeStruct((n * nj, 2, cp), jnp.float32)),
        grid=(n, nj),
        in_specs=[
            pl.BlockSpec((1, t, k), lambda i, j: (i, j, 0)),
            pl.BlockSpec((k, cp), lambda i, j: (0, 0)),      # weights stay resident
        ],
        out_specs=(
            pl.BlockSpec((1, t, cp), lambda i, j: (i, j, 0)),
            pl.BlockSpec((1, 2, cp), lambda i, j: (i * nj + j, 0, 0)),
        ),
        compiler_params=pltpu.CompilerParams(
            dimension_semantics=("parallel", "parallel")),
    )(x_taps, wf)

    stats = jnp.sum(part, axis=0)        # tiny (grid_steps, 2, CP) reduction
    return y, stats[0], stats[1]


# ----------------------- BN normalize + ReLU kernel -------------------------
def _affine_relu_kernel(y_ref, scale_ref, shift_ref, o_ref):
    # y_ref: (T, CP), scale/shift: (1, CP) (BN folded to one FMA), o_ref: (T, CP)
    o_ref[...] = jnp.maximum(y_ref[...] * scale_ref[...] + shift_ref[...], 0.0)


def bn_relu(y, mean, var, gamma_p, beta_p, *, tile_m=128):
    """y: (M, CP). Training-mode BN (given batch mean/var) + ReLU, tiled over M."""
    m, cp = y.shape
    scale = gamma_p * jax.lax.rsqrt(var + EPS)       # per-channel, computed once
    shift = beta_p - mean * scale
    t = tile_m if m % tile_m == 0 else m
    return pl.pallas_call(
        _affine_relu_kernel,
        out_shape=jax.ShapeDtypeStruct((m, cp), jnp.float32),
        grid=(m // t,),
        in_specs=[
            pl.BlockSpec((t, cp), lambda i: (i, 0)),
            pl.BlockSpec((1, cp), lambda i: (0, 0)),
            pl.BlockSpec((1, cp), lambda i: (0, 0)),
        ],
        out_specs=pl.BlockSpec((t, cp), lambda i: (i, 0)),
        compiler_params=pltpu.CompilerParams(dimension_semantics=("parallel",)),
    )(y, scale.reshape(1, cp), shift.reshape(1, cp))


# ------------------------------ module forward ------------------------------
def conv3d_block_forward(x_nchw, params):
    """PyTorch-equivalent forward. x_nchw: (N, Cin, H, W) f32."""
    n, _, h, wd = x_nchw.shape
    hw = h * wd
    m = n * hw
    x = jnp.transpose(x_nchw, (0, 2, 3, 1))              # NCHW -> NHWC
    for (w, b, gamma, beta) in params:
        # conv bias `b` is dropped on purpose: it cancels under training-mode BN.
        cout = w.shape[-1]
        y, s, ss = conv3x3_stats(x, w)                   # (N, HW, CP) + stats
        cp = y.shape[-1]
        mean = s / m
        var = ss / m - mean * mean                       # biased, like PyTorch
        gamma_p = jnp.pad(gamma, (0, cp - cout))
        beta_p = jnp.pad(beta, (0, cp - cout))
        y = bn_relu(y.reshape(m, cp), mean, var, gamma_p, beta_p)
        x = y.reshape(n, h, wd, cp)[..., :cout]          # drop lane padding
    return jnp.transpose(x, (0, 3, 1, 2))                # NHWC -> NCHW


def init_params(key, ch_in, ch_out):
    """Deterministic parameter init matching the module's shapes."""
    params = []
    cin = ch_in
    for _ in range(3):
        key, kw, kb = jax.random.split(key, 3)
        fan_in = 3 * 3 * cin
        w = jax.random.normal(kw, (3, 3, cin, ch_out), jnp.float32) / jnp.sqrt(fan_in)
        b = 0.01 * jax.random.normal(kb, (ch_out,), jnp.float32)
        gamma = jnp.ones((ch_out,), jnp.float32)         # PyTorch BN init
        beta = jnp.zeros((ch_out,), jnp.float32)
        params.append((w, b, gamma, beta))
        cin = ch_out
    return params


# ------------------------------ pure-JAX reference ---------------------------
def reference_forward(x_nchw, params):
    x = jnp.transpose(x_nchw, (0, 2, 3, 1))
    for (w, b, gamma, beta) in params:
        y = jax.lax.conv_general_dilated(
            x, w, window_strides=(1, 1), padding="SAME",
            dimension_numbers=("NHWC", "HWIO", "NHWC")) + b   # bias kept here
        mean = y.mean(axis=(0, 1, 2))
        var = y.var(axis=(0, 1, 2))
        y = (y - mean) * jax.lax.rsqrt(var + EPS) * gamma + beta
        x = jnp.maximum(y, 0.0)
    return jnp.transpose(x, (0, 3, 1, 2))


if __name__ == "__main__":
    key = jax.random.PRNGKey(0)
    k_x, k_p = jax.random.split(key)

    N, CH_IN, CH_OUT, H, W = 2, 4, 8, 16, 16
    x = jax.random.normal(k_x, (N, CH_IN, H, W), jnp.float32)   # PyTorch NCHW input
    params = init_params(k_p, CH_IN, CH_OUT)

    out = jax.block_until_ready(conv3d_block_forward(x, params))

    ref = jax.block_until_ready(reference_forward(x, params))
    assert out.shape == (N, CH_OUT, H, W)
    assert jnp.allclose(out, ref, rtol=1e-3, atol=1e-3), (
        f"max abs err {float(jnp.max(jnp.abs(out - ref)))}")

    print("KERNEL_OK")
</pallas_src>

<mosaic_0001>
module attributes {stable_mosaic.version = 11 : i64} {
  func.func @_conv_stats_kernel(%arg0: i32, %arg1: i32, %arg2: memref<1x128x36xf32, #tpu.memory_space<vmem>>, %arg3: memref<36x128xf32, #tpu.memory_space<vmem>>, %arg4: memref<1x128x128xf32, #tpu.memory_space<vmem>>, %arg5: memref<1x2x128xf32, #tpu.memory_space<vmem>>) attributes {dimension_semantics = [#tpu.dimension_semantics<parallel>, #tpu.dimension_semantics<parallel>], iteration_bounds = array<i64: 2, 2>, scalar_prefetch = 0 : i64, scratch_operands = 0 : i64, tpu.core_type = #tpu.core_type<tc>, window_params = [{transform_indices = @transform_0, window_bounds = array<i64: 1, 128, 36>}, {pipeline_mode = #tpu.pipeline_mode<synchronous>, transform_indices = @transform_1, window_bounds = array<i64: 36, 128>}, {transform_indices = @transform_2, window_bounds = array<i64: 1, 128, 128>}, {transform_indices = @transform_3, window_bounds = array<i64: 1, 2, 128>}]} {
    %c0 = arith.constant 0 : index
    %c0_0 = arith.constant 0 : index
    %c0_1 = arith.constant 0 : index
    %0 = vector.load %arg2[%c0, %c0_0, %c0_1] : memref<1x128x36xf32, #tpu.memory_space<vmem>>, vector<1x128x36xf32>
    %1 = vector.shape_cast %0 : vector<1x128x36xf32> to vector<128x36xf32>
    %c0_2 = arith.constant 0 : index
    %c0_3 = arith.constant 0 : index
    %2 = vector.load %arg3[%c0_2, %c0_3] : memref<36x128xf32, #tpu.memory_space<vmem>>, vector<36x128xf32>
    %cst = arith.constant dense<0.000000e+00> : vector<128x128xf32>
    %3 = tpu.matmul %1, %2, %cst {dimension_numbers = #tpu.dot_dimension_numbers<[1], [0], [0], [1], [0, 0, 1, 1], [], []>} : vector<128x36xf32>, vector<36x128xf32>, vector<128x128xf32> -> vector<128x128xf32>
    %c0_4 = arith.constant 0 : index
    %c0_5 = arith.constant 0 : index
    %c0_6 = arith.constant 0 : index
    %4 = vector.load %arg4[%c0_4, %c0_5, %c0_6] : memref<1x128x128xf32, #tpu.memory_space<vmem>>, vector<1x128x128xf32>
    %5 = vector.shape_cast %4 : vector<1x128x128xf32> to vector<128x128xf32>
    %6 = vector.shape_cast %3 : vector<128x128xf32> to vector<1x128x128xf32>
    tpu.vector_store %arg4[%c0_4, %c0_5, %c0_6], %6 {strides = array<i32>} : memref<1x128x128xf32, #tpu.memory_space<vmem>>, vector<1x128x128xf32>,
    %cst_7 = arith.constant dense<0.000000e+00> : vector<128xf32>
    %7 = vector.multi_reduction <add>, %3, %cst_7 [0] : vector<128x128xf32> to vector<128xf32>
    %8 = vector.shape_cast %7 : vector<128xf32> to vector<1x128xf32>
    %9 = arith.mulf %3, %3 : vector<128x128xf32>
    %cst_8 = arith.constant dense<0.000000e+00> : vector<128xf32>
    %10 = vector.multi_reduction <add>, %9, %cst_8 [0] : vector<128x128xf32> to vector<128xf32>
    %11 = vector.shape_cast %10 : vector<128xf32> to vector<1x128xf32>
    %12 = tpu.concatenate %8, %11 in 0 : vector<1x128xf32>, vector<1x128xf32> -> vector<2x128xf32>
    %c0_9 = arith.constant 0 : index
    %c0_10 = arith.constant 0 : index
    %c0_11 = arith.constant 0 : index
    %13 = vector.load %arg5[%c0_9, %c0_10, %c0_11] : memref<1x2x128xf32, #tpu.memory_space<vmem>>, vector<1x2x128xf32>
    %14 = vector.shape_cast %13 : vector<1x2x128xf32> to vector<2x128xf32>
    %15 = vector.shape_cast %12 : vector<2x128xf32> to vector<1x2x128xf32>
    tpu.vector_store %arg5[%c0_9, %c0_10, %c0_11], %15 {strides = array<i32>} : memref<1x2x128xf32, #tpu.memory_space<vmem>>, vector<1x2x128xf32>,
    return
  }
  func.func @transform_0(%arg0: i32, %arg1: i32) -> (i32, i32, i32) {
    %c0_i32 = arith.constant 0 : i32
    %c0_i32_0 = arith.constant 0 : i32
    return %arg0, %arg1, %c0_i32 : i32, i32, i32
  }
  func.func @transform_1(%arg0: i32, %arg1: i32) -> (i32, i32) {
    %c0_i32 = arith.constant 0 : i32
    %c0_i32_0 = arith.constant 0 : i32
    %c0_i32_1 = arith.constant 0 : i32
    return %c0_i32, %c0_i32_0 : i32, i32
  }
  func.func @transform_2(%arg0: i32, %arg1: i32) -> (i32, i32, i32) {
    %c0_i32 = arith.constant 0 : i32
    %c0_i32_0 = arith.constant 0 : i32
    return %arg0, %arg1, %c0_i32 : i32, i32, i32
  }
  func.func @transform_3(%arg0: i32, %arg1: i32) -> (i32, i32, i32) {
    %c2_i32 = arith.constant 2 : i32
    %0 = arith.muli %arg0, %c2_i32 : i32
    %1 = arith.addi %0, %arg1 : i32
    %c0_i32 = arith.constant 0 : i32
    %c0_i32_0 = arith.constant 0 : i32
    %c0_i32_1 = arith.constant 0 : i32
    return %1, %c0_i32, %c0_i32_0 : i32, i32, i32
  }
}

</mosaic_0001>

<bundles_post_ra>
// kernel: tpu_custom_call.1
= control target key start
LH: loop header
LB: loop body
LE: loop exit
PB: predicated region body
PF: predicated region fallthrough
CT: control target
= control target key end

     0   :  { %s1405_s0 = inlined_call_operand.vmem [shape: f32[2,256,36], index: 0, kind: input, shape index: {}]   ;;  %s1406_s1 = inlined_call_operand.vmem [shape: f32[36,128], index: 1, kind: input, shape index: {}]   ;;  %s1407_s2 = inlined_call_operand.hbm [shape: f32[2,256,128], index: 2, kind: output, shape index: {0}]   ;;  %s1408_s3 = inlined_call_operand.hbm [shape: f32[4,2,128], index: 3, kind: output, shape index: {1}]  }
   0x1   :  { %1412 = sst [smem:[#allocation10_spill]] %s1408_s3 }
   0x2   :  { %9 = vsyncpa [#allocation3], 0 }
   0x3   :  { %11 = vsyncpa [#allocation3 + $0x1], 0 }
   0x4   :  { %12 = vsyncpa [#allocation5], 0 }
   0x5   :  { %14 = vsyncpa [#allocation5 + $0x1], 0  ;;  %s1050_s12 = smov 0   ;;  %s1052_s13 = smov 0  }
   0x6   :  { %s1054_s14 = smov 0   ;;  %s1056_s15 = smov 0  }
   0x7   :  { %s1058_s16 = smov 0   ;;  %s1060_s17 = smov 0  }
   0x8   :  { %s1062_s18 = smov 0   ;;  %s1064_s19 = smov 0  }
   0x9   :  { %s1066_s20 = smov 0   ;;  %s1068_s21 = smov 0  }
   0xa   :  { %s1070_s22 = smov 0  }
   0xb LB: > { %1413 = sst [smem:[#allocation8_spill]] %s996_s15  ;;  %s665_s23 = sadd.s32 4294967295, %s1024_s22   ;;  %s1024_s22 = sphi %s1070_s22, %s20_s22   ;;  %s1020_s21 = sphi %s1068_s21, %s1434_s21   ;;  %s1016_s20 = sphi %s1066_s20, %s1433_s20   ;;  %s1012_s19 = sphi %s1064_s19, %s1432_s19   ;;  %s1008_s18 = sphi %s1062_s18, %s1431_s18   ;;  %s1004_s17 = sphi %s1060_s17, %s1430_s17   ;;  %s1000_s16 = sphi %s1058_s16, %s1429_s16   ;;  %s996_s15 = sphi %s1056_s15, %s1428_s15   ;;  %s992_s14 = sphi %s1054_s14, %s1427_s14   ;;  %s988_s13 = sphi %s1052_s13, %s1426_s13   ;;  %s984_s12 = sphi %s1050_s12, %s1425_s12  }
   0xc   : > { %s666_s24 = sadd.s32 4294967294, %s1024_s22   ;;  %s29_s25 = sadd.s32 1, %s1016_s20 }
   0xd   : > { %s32_s26 = sadd.s32 1, %s1020_s21  ;;  %p30_p0 = scmp.ge.s32.totalorder %s29_s25, 2 }
   0xe   : > { %s90_s27 = sadd.s32 1, %s1004_s17  ;;  %p100_p1 = scmp.ne.s32.totalorder %s1004_s17, %s1000_s16 }
   0xf   : > { %p1112_p2 = scmp.eq.s32.totalorder %s665_s23, 3  ;;  %s1436_s25 = smov (%p30_p0, %s29_s25), 0 }
  0x10   : > { %s1438_s26 = smov (!%p30_p0, %s32_s26), %s1020_s21  ;;  %s86_s29 = ssub.s32 %s1016_s20, %s1436_s25 }
  0x11   : > { %p1123_p3 = por %p1112_p2, %p100_p1  ;;  %p34_p4 = scmp.ge.s32.totalorder %s1438_s26, 2 }
  0x12   : > { %p106_p5 = scmp.ne.s32.totalorder %s1000_s16, %s996_s15  ;;  %p1129_p6 = scmp.eq.s32.totalorder %s666_s24, 3 }
  0x13   : > { %s667_s5 = sshll.u32 %s1020_s21, 1  ;;  %s1440_s26 = smov (%p34_p4, %s1438_s26), 0 }
  0x14   : > { %1417 = sst [smem:[#allocation9_spill]] %s1440_s26  ;;  %p1138_p7 = por %p1129_p6, %p106_p5 }
  0x15   : > { %s114_s7 = sadd.s32 %s1016_s20, %s667_s5  ;;  %s85_s8 = ssub.s32 %s1020_s21, %s1440_s26 }
  0x16   : > { %s668_s9 = sshll.u32 %s1440_s26, 1  ;;  %s87_s10 = sor.u32 %s86_s29, %s85_s8 }
  0x17   : > { %s116_s11 = sadd.s32 %s668_s9, %s1436_s25  ;;  %p88_p8 = scmp.eq.s32.totalorder %s87_s10, 0 }
  0x18   : > { %s117_s23 = ssub.s32 %s114_s7, %s116_s11  ;;  %s120_s24 = sadd.s32 1, %s992_s14 }
  0x19   : > { %p118_p9 = scmp.eq.s32.totalorder %s117_s23, 0  ;;  %p130_p10 = scmp.ne.s32.totalorder %s992_s14, %s988_s13 }
  0x1a   : > { %s1149_s15 = scalar_select %p88_p8, %s1004_s17, %s90_s27  }
  0x1b   : > { %s1152_s3 = scalar_select %p118_p9, %s992_s14, %s120_s24  }
  0x1c   : > { %p136_p11 = scmp.ne.s32.totalorder %s988_s13, %s984_s12  ;;  %p671_p12 = scmp.ge.s32.totalorder %s1024_s22, 1 }
  0x1d   : > { %p171_p13 = scmp.lt.s32.totalorder %s1024_s22, 5  ;;  %p1162_p0 = por %p130_p10, %p1112_p2 }
  0x1e   : > { %p1168_p1 = por %p136_p11, %p1129_p6 }
  0x1f   : > { %p172_p4 = pnand %p671_p12, %p171_p13 }
  0x20   : > { %v233_v0 = vld [vmem:[%s1406_s1] sm:$0xff] (!%p172_p4)  ;;  %v234_v1 = vld [vmem:[%s1406_s1 + $0x8] sm:$0xff] (!%p172_p4)  ;;  %v235_v2 = vld [vmem:[%s1406_s1 + $0x10] sm:$0xff] (!%p172_p4)  ;;  %s1182_s4 = sshll.u32 (!%p172_p4), %s1008_s18, 4  ;;  %p205_p2 = scmp.lt.s32.totalorder (!%p172_p4), %s1012_s19, 1  ;;  %vm287_vm0 = vcmask (!%p172_p4), 1043456  }
  0x21   : > { %175 = sbr.rel (%p172_p4) target bundleno = 334 (0x14e), region = 28  ;;  %v758_v3 = vpack.c.bf16 (!%p172_p4), %v234_v1, %v233_v0  ;;  %v236_v4 = vld [vmem:[%s1406_s1 + $0x18] sm:$0xff] (!%p172_p4)  ;;  %p207_p5 = scmp.lt.s32.totalorder (!%p172_p4), %s1182_s4, 31  ;;  %v237_v6 = vld [vmem:[%s1406_s1 + $0x20] sm:$0xf] (!%p172_p4)  ;;  %vm238_vm1 = vcmask (!%p172_p4), 293888  }
  0x22   : > { %v762_v5 = vpack.c.bf16 (!%p172_p4), %v236_v4, %v235_v2 }
  0x23   : > { %759 = vmatprep.subr.bf16.mxu0 (!%p172_p4), %v758_v3  ;;  %766 = vmatprep.subr.bf16.mxu1 (!%p172_p4), %v758_v3 }
  0x24   : > { %761 = vmatpush3.bf16.msra.mxu0 (!%p172_p4), %v758_v3  ;;  %769 = vmatpush3.bf16.msra.mxu1 (!%p172_p4), %v758_v3 }
  0x25   : > { %763 = vmatprep.subr.bf16.mxu0 (!%p172_p4), %v762_v5  ;;  %767 = vmatprep.subr.bf16.mxu1 (!%p172_p4), %v762_v5 }
  0x28   : > { %s206_s24 = scalar_select %p205_p2, %s1012_s19, 1  ;;  %765 = vmatpush3.bf16.msra.mxu0 %v762_v5  ;;  %770 = vmatpush3.bf16.msra.mxu1 %v762_v5 }
  0x29   : > { %s208_s27 = scalar_select %p207_p5, %s1182_s4, 31  ;;  %732 = vmatprep.subr.msk.mxu0 %vm287_vm0, %v237_v6  ;;  %768 = vmatprep.subr.msk.mxu1 %vm287_vm0, %v237_v6 }
  0x2a   : > { %s675_s7 = sshll.u32 %s206_s24, 5  ;;  %s194_s24 = sand.u32 1, %s1000_s16  }
  0x2b   : > { %s210_s8 = sadd.s32 %s675_s7, %s208_s27  ;;  %s672_s27 = sshll.u32 %s194_s24, 7 }
  0x2c   : > { %s676_s10 = sshll.u32 %s210_s8, 3  ;;  %733 = vmatpush3.msk.msra.mxu0 %vm287_vm0, %v237_v6  ;;  %771 = vmatpush3.msk.msra.mxu1 %vm287_vm0, %v237_v6  ;;  %s697_s7 = sshll.u32 %s1012_s19, 5 }
  0x2d   : > { %s1197_s26 = scalar_lea.vmem %s1405_s0, %s676_s10  ;;  %s1241_s8 = scalar_lea.vmem [#allocation2], %s672_s27 }
  0x2e   : > { %v217_v7 = vld [vmem:[%s1197_s26] sm:$0xff]  ;;  %v218_v8 = vld [vmem:[%s1197_s26 + $0x8] sm:$0xff]  ;;  %v219_v10 = vld [vmem:[%s1197_s26 + $0x10] sm:$0xff]  ;;  %s534_s28 = sshll.u32 %s1241_s8, 4  ;;  %s1289_s23 = scalar_lea.sflag [#allocation3], %s194_s24  ;;  %s1280_s28 = int_to_ptr.vmem [resolvable:$true] %s534_s28 }
  0x2f   : > { %734 = vmatprep.mubr.msk.f32.mxu0 %vm238_vm1, %v217_v7  ;;  %v225_v9 = vld [vmem:[%s1197_s26 + $0x40] sm:$0xff]  ;;  %v226_v11 = vld [vmem:[%s1197_s26 + $0x48] sm:$0xff]  ;;  %v227_v12 = vld [vmem:[%s1197_s26 + $0x50] sm:$0xff]  ;;  %s874_s27 = scalar_lea.vmem %s1280_s28, 2048 }
  0x30   : > { %746 = vmatprep.mubr.msk.f32.mxu1 %vm238_vm1, %v225_v9  ;;  %735 = vmatmul.mubr.msk.f32.vlgmr.msra.gmra.mrb[0].mxu0 %vm238_vm1, %v218_v8  ;;  %v220_v13 = vld [vmem:[%s1197_s26 + $0x18] sm:$0xff]  ;;  %v221_v15 = vld [vmem:[%s1197_s26 + $0x20] sm:$0xff]  ;;  %v222_v17 = vld [vmem:[%s1197_s26 + $0x28] sm:$0xff]  ;;  %p875_p6 = scmp.ne.s32.totalorder %s1280_s28, %s874_s27 }
  0x31   : > { %747 = vmatmul.mubr.msk.f32.vlgmr.msra.gmra.mrb[0].mxu1 %vm238_vm1, %v226_v11  ;;  %737 = vmatprep.mubr.msk.f32.mxu0 %vm238_vm1, %v219_v10  ;;  %v228_v14 = vld [vmem:[%s1197_s26 + $0x58] sm:$0xff]  ;;  %v229_v16 = vld [vmem:[%s1197_s26 + $0x60] sm:$0xff]  ;;  %v230_v18 = vld [vmem:[%s1197_s26 + $0x68] sm:$0xff] }
  0x32   : > { %749 = vmatprep.mubr.msk.f32.mxu1 %vm238_vm1, %v227_v12  ;;  %v223_v19 = vld [vmem:[%s1197_s26 + $0x30] sm:$0xff]  ;;  %v224_v21 = vld [vmem:[%s1197_s26 + $0x38] sm:$0xff]  ;;  %p876_p8 = pnand %p875_p6, %p1123_p3 }
  0x33   : > { %v231_v20 = vld [vmem:[%s1197_s26 + $0x70] sm:$0xff]  ;;  %v232_v22 = vld [vmem:[%s1197_s26 + $0x78] sm:$0xff]  ;;  %s531_s26 = sadd.s32 %s697_s7, %s1182_s4  ;;  %s1026_s7 = smov [#allocation2]  }
  0x34   : > { %738 = vmatmul.mubr.msk.f32.gmra.mrb[2].mxu0 %vm238_vm1, %v220_v13  ;;  %s698_s4 = sshll.u32 %s531_s26, 7  ;;  %p877_p9 = pneg %p876_p8 }
  0x35   : > { %750 = vmatmul.mubr.msk.f32.gmra.mrb[2].mxu1 %vm238_vm1, %v228_v14  ;;  %740 = vmatprep.mubr.msk.f32.mxu0 %vm238_vm1, %v221_v15  ;;  %s1273_s11 = scalar_lea.hbm %s1407_s2, %s698_s4  ;;  %s878_s26 = sshll.u32 %s1026_s7, 4  ;;  %s879_s26 = int_to_ptr.vmem [resolvable:$false] %s878_s26 }
  0x36   : > { %752 = vmatprep.mubr.msk.f32.mxu1 %vm238_vm1, %v229_v16  ;;  %s880_s4 = scalar_lea.vmem %s879_s26, 4096  ;;  %p881_p10 = scmp.lt.s32.totalorder %s1280_s28, %s879_s26 }
  0x37   : > { %p882_p11 = scmp.lt.s32.totalorder %s880_s4, %s874_s27 }
  0x38   : > { %741 = vmatmul.mubr.msk.f32.gmra.mrb[4].mxu0 %vm238_vm1, %v222_v17 }
  0x39   : > { %753 = vmatmul.mubr.msk.f32.gmra.mrb[4].mxu1 %vm238_vm1, %v230_v18  ;;  %743 = vmatprep.mubr.msk.f32.mxu0 %vm238_vm1, %v223_v19  ;;  %p883_p12 = por %p882_p11, %p881_p10 }
  0x3a   : > { %755 = vmatprep.mubr.msk.f32.mxu1 %vm238_vm1, %v231_v20 }
  0x3b   : > { %p884_p13 = pnand %p883_p12, %p877_p9 }
  0x3c   : > { %744 = vmatmul.mubr.msk.f32.gmra.mrb[6].mxu0 %vm238_vm1, %v224_v21 }
  0x3d   : > { %756 = vmatmul.mubr.msk.f32.gmra.mrb[6].mxu1 %vm238_vm1, %v232_v22 }
 0x103   : > { %v736_v23 = vpop.f32.mrb[0].mxu0 }
 0x104   : > { %v1238_v24 = vpop.f32.mrb[0].mxu1  ;;  %437 = vst [vmem:[%s1241_s8 + $0x8] sm:$0xff] %v736_v23  ;;  %v474_v25 = vmul.f32 %v736_v23, %v736_v23  ;;  %v357_v26 = vpop.f32.mrb[1].mxu0 }
 0x105   : > { %445 = vst [vmem:[%s1241_s8 + $0x48] sm:$0xff] %v1238_v24  ;;  %v1246_v27 = vpop.f32.mrb[1].mxu1  ;;  %436 = vst [vmem:[%s1241_s8] sm:$0xff] %v357_v26  ;;  %v452_v28 = vadd.f32 %v736_v23, %v357_v26  ;;  %v473_v29 = vmul.f32 %v357_v26, %v357_v26 }
 0x106   : > { %444 = vst [vmem:[%s1241_s8 + $0x40] sm:$0xff] %v1246_v27 }
 0x107   : > { %v489_v30 = vadd.f32 %v474_v25, %v473_v29  ;;  %v739_v31 = vpop.f32.mrb[2].mxu0 }
 0x108   : > { %v1252_v32 = vpop.f32.mrb[2].mxu1  ;;  %439 = vst [vmem:[%s1241_s8 + $0x18] sm:$0xff] %v739_v31  ;;  %v367_v33 = vpop.f32.mrb[3].mxu0  ;;  %v476_v37 = vmul.f32 %v739_v31, %v739_v31 }
 0x109   : > { %447 = vst [vmem:[%s1241_s8 + $0x58] sm:$0xff] %v1252_v32  ;;  %v1257_v34 = vpop.f32.mrb[3].mxu1  ;;  %438 = vst [vmem:[%s1241_s8 + $0x10] sm:$0xff] %v367_v33  ;;  %v453_v35 = vadd.f32 %v452_v28, %v367_v33  ;;  %v475_v36 = vmul.f32 %v367_v33, %v367_v33 }
 0x10a   : > { %446 = vst [vmem:[%s1241_s8 + $0x50] sm:$0xff] %v1257_v34 }
 0x10b   : > { %v490_v38 = vadd.f32 %v489_v30, %v475_v36  ;;  %v742_v39 = vpop.f32.mrb[4].mxu0  ;;  %v454_v40 = vadd.f32 %v739_v31, %v453_v35 }
 0x10c   : > { %v1262_v41 = vpop.f32.mrb[4].mxu1  ;;  %441 = vst [vmem:[%s1241_s8 + $0x28] sm:$0xff] %v742_v39  ;;  %v377_v42 = vpop.f32.mrb[5].mxu0  ;;  %v478_v47 = vmul.f32 %v742_v39, %v742_v39 }
 0x10d   : > { %449 = vst [vmem:[%s1241_s8 + $0x68] sm:$0xff] %v1262_v41  ;;  %v1267_v43 = vpop.f32.mrb[5].mxu1  ;;  %440 = vst [vmem:[%s1241_s8 + $0x20] sm:$0xff] %v377_v42  ;;  %v455_v44 = vadd.f32 %v454_v40, %v377_v42  ;;  %v477_v45 = vmul.f32 %v377_v42, %v377_v42  ;;  %v491_v46 = vadd.f32 %v490_v38, %v476_v37 }
 0x10e   : > { %448 = vst [vmem:[%s1241_s8 + $0x60] sm:$0xff] %v1267_v43 }
 0x10f   : > { %v492_v48 = vadd.f32 %v491_v46, %v477_v45  ;;  %v745_v49 = vpop.f32.mrb[6].mxu0  ;;  %v456_v50 = vadd.f32 %v742_v39, %v455_v44 }
 0x110   : > { %v1278_v51 = vpop.f32.mrb[6].mxu1  ;;  %443 = vst [vmem:[%s1241_s8 + $0x38] sm:$0xff] %v745_v49  ;;  %v387_v52 = vpop.f32.mrb[7].mxu0 }
 0x111   : > { %451 = vst [vmem:[%s1241_s8 + $0x78] sm:$0xff] %v1278_v51  ;;  %v427_v53 = vpop.f32.mrb[7].mxu1  ;;  %442 = vst [vmem:[%s1241_s8 + $0x30] sm:$0xff] %v387_v52  ;;  %v457_v54 = vadd.f32 %v456_v50, %v387_v52  ;;  %v479_v55 = vmul.f32 %v387_v52, %v387_v52  ;;  %v493_v56 = vadd.f32 %v492_v48, %v478_v47 }
 0x112   : > { %450 = vst [vmem:[%s1241_s8 + $0x70] sm:$0xff] %v427_v53 }
 0x113   : > { %887 = shalt.err (!%p884_p13)
}
 0x114   : > { %s888_s24 = scalar_lea.hbm %s1273_s11, 2048  ;;  %s892_s10 = scalar_lea.hbm %s1407_s2, 8192 }
 0x115   : > { %p889_p4 = scmp.ne.s32.totalorder %s1273_s11, %s888_s24  ;;  %p893_p6 = scmp.lt.u32.totalorder %s1273_s11, %s1407_s2 }
 0x116   : > { %p894_p8 = scmp.lt.u32.totalorder %s892_s10, %s888_s24  ;;  %p896_p10 = scmp.lt.u32.totalorder %s888_s24, %s1273_s11 }
 0x117   : > { %p890_p2 = pnand %p889_p4, %p1123_p3 }
 0x118   : > { %p895_p9 = por %p894_p8, %p893_p6 }
 0x119   : > { %p891_p5 = pneg %p890_p2 }
 0x11a   : > { %p897_p11 = por %p896_p10, %p895_p9 }
 0x11c   : > { %p898_p12 = pnand %p897_p11, %p891_p5 }
 0x11e   : > { %901 = shalt.err (!%p898_p12)
}
 0x11f   : > { %s1027_s27 = smov 128   ;;  %s1028_s4 = smov 8   ;;  %v480_v57 = vmul.f32 %v745_v49, %v745_v49  ;;  %v458_v58 = vadd.f32 %v745_v49, %v457_v54  ;;  %v494_v59 = vadd.f32 %v493_v56, %v479_v55  ;;  %v481_v60 = vmul.f32 %v1246_v27, %v1246_v27 }
 0x120   : > { %772 = dma.vmem_to_hbm [thread:$0]  (%p1123_p3), %s1280_s28, 2048, %s1273_s11, %s1289_s23, %s1027_s27, %s1027_s27, %s1028_s4   ;;  %v482_v63 = vmul.f32 %v1238_v24, %v1238_v24  ;;  %v483_v2 = vmul.f32 %v1257_v34, %v1257_v34  ;;  %v484_v5 = vmul.f32 %v1252_v32, %v1252_v32  ;;  %v485_v8 = vmul.f32 %v1267_v43, %v1267_v43 }
 0x121   : > { %v495_v61 = vadd.f32 %v494_v59, %v480_v57  ;;  %v459_v62 = vadd.f32 %v458_v58, %v1246_v27  ;;  %v486_v11 = vmul.f32 %v1262_v41, %v1262_v41  ;;  %v487_v14 = vmul.f32 %v427_v53, %v427_v53  ;;  %s201_s30 = sand.u32 1, %s988_s13   ;;  %s699_s11 = sshll.u32 %s1012_s19, 1 }
 0x122   : > { %v488_v17 = vmul.f32 %v1278_v51, %v1278_v51  ;;  %s673_s28 = sshll.u32 %s201_s30, 1  ;;  %s545_s23 = sadd.s32 %s1008_s18, %s699_s11  ;;  %vm510_vm2 = vcmask 1040384  }
 0x123   : > { %v496_v0 = vadd.f32 %v495_v61, %v481_v60  ;;  %v460_v1 = vadd.f32 %v1238_v24, %v459_v62  ;;  %s700_s24 = sshll.u32 %s545_s23, 5  ;;  %s203_s8 = scalar_lea.vmem [#allocation4], %s673_s28 }
 0x124   : > { %s552_s9 = sshll.u32 %s203_s8, 4  ;;  %s1421_s26 = sld [smem:[#allocation10_spill]]  ;;  %s1342_s9 = int_to_ptr.vmem [resolvable:$true] %s552_s9 }
 0x125   : > { %v461_v3 = vadd.f32 %v460_v1, %v1257_v34  ;;  %v497_v4 = vadd.f32 %v496_v0, %v482_v63  ;;  %s519_s18 = scalar_lea.sflag [#allocation5], %s201_s30  ;;  %s902_s19 = scalar_lea.vmem %s1342_s9, 32 }
 0x126   : > { %p903_p3 = scmp.ne.s32.totalorder %s1342_s9, %s902_s19  ;;  %s1029_s4 = smov [#allocation4]  }
 0x127   : > { %v498_v6 = vadd.f32 %v497_v4, %v483_v2  ;;  %v462_v7 = vadd.f32 %v1252_v32, %v461_v3  ;;  %s906_s28 = sshll.u32 %s1029_s4, 4  ;;  %s907_s28 = int_to_ptr.vmem [resolvable:$false] %s906_s28 }
 0x128   : > { %p904_p13 = pnand %p903_p3, %p1162_p0  ;;  %s908_s11 = scalar_lea.vmem %s907_s28, 64 }
 0x129   : > { %v463_v9 = vadd.f32 %v462_v7, %v1267_v43  ;;  %v499_v10 = vadd.f32 %v498_v6, %v484_v5  ;;  %p909_p2 = scmp.lt.s32.totalorder %s1342_s9, %s907_s28  ;;  %p910_p5 = scmp.lt.s32.totalorder %s908_s11, %s902_s19 }
 0x12a   : > { %s1340_s27 = scalar_lea.hbm %s1421_s26, %s700_s24  ;;  %p905_p4 = pneg %p904_p13 }
 0x12b   : > { %v500_v12 = vadd.f32 %v499_v10, %v485_v8  ;;  %v464_v13 = vadd.f32 %v1262_v41, %v463_v9  ;;  %p911_p6 = por %p910_p5, %p909_p2 }
 0x12d   : > { %v465_v15 = vadd.f32 %v464_v13, %v427_v53  ;;  %v501_v16 = vadd.f32 %v500_v12, %v486_v11  ;;  %p912_p8 = pnand %p911_p6, %p905_p4 }
 0x12f   : > { %v466_v18 = vadd.f32 %v1278_v51, %v465_v15  ;;  %v502_v19 = vadd.f32 %v501_v16, %v487_v14 }
 0x131   : > { %v467_v20 = vrot.slane %v466_v18, 4  ;;  %v503_v21 = vadd.f32 %v502_v19, %v488_v17 }
 0x133   : > { %v468_v22 = vadd.f32 %v467_v20, %v466_v18  ;;  %v504_v23 = vrot.slane %v503_v21, 4 }
 0x135   : > { %v469_v24 = vrot.slane %v468_v22, 2  ;;  %v505_v25 = vadd.f32 %v504_v23, %v503_v21 }
 0x137   : > { %v470_v26 = vadd.f32 %v469_v24, %v468_v22  ;;  %v506_v27 = vrot.slane %v505_v25, 2 }
 0x139   : > { %v471_v28 = vrot.slane %v470_v26, 1  ;;  %v507_v29 = vadd.f32 %v506_v27, %v505_v25 }
 0x13b   : > { %v508_v30 = vrot.slane %v507_v29, 1  ;;  %v472_v31 = vadd.f32 %v471_v28, %v470_v26 }
 0x13d   : > { %v509_v32 = vadd.f32 %v508_v30, %v507_v29 }
 0x13f   : > { %v511_v33 = vsel %vm510_vm2, %v472_v31, %v509_v32 }
 0x140   : > { %512 = vst [vmem:[%s203_s8] sm:$0x3] %v511_v33 }
 0x141   : > { %915 = shalt.err (!%p912_p8)
}
 0x142   : > { %s916_s30 = scalar_lea.hbm %s1340_s27, 32  ;;  %s920_s8 = scalar_lea.hbm %s1421_s26, 128 }
 0x143   : > { %p917_p9 = scmp.ne.s32.totalorder %s1340_s27, %s916_s30  ;;  %p921_p12 = scmp.lt.u32.totalorder %s1340_s27, %s1421_s26 }
 0x144   : > { %p922_p3 = scmp.lt.u32.totalorder %s920_s8, %s916_s30  ;;  %p924_p4 = scmp.lt.u32.totalorder %s916_s30, %s1340_s27 }
 0x145   : > { %p918_p10 = pnand %p917_p9, %p1162_p0 }
 0x146   : > { %p923_p13 = por %p922_p3, %p921_p12 }
 0x147   : > { %p919_p11 = pneg %p918_p10 }
 0x148   : > { %p925_p2 = por %p924_p4, %p923_p13 }
 0x14a   : > { %p926_p5 = pnand %p925_p2, %p919_p11 }
 0x14c   : > { %929 = shalt.err (!%p926_p5)
}
 0x14d   : > { %773 = dma.vmem_to_hbm [thread:$0]  (%p1162_p0), %s1342_s9, 32, %s1340_s27, %s519_s18  }
 0x14e PF: > { %s1422_s19 = sld [smem:[#allocation8_spill]]  ;;  %p783_p6 = scmp.ge.s32.totalorder %s1024_s22, 2 }
 0x150   : > { %p777_p8 = pnand %p783_p6, %p1138_p7 }
 0x154   : > { %s564_s4 = sand.u32 1, %s1422_s19  }
 0x155   : > { %s565_s28 = scalar_lea.sflag [#allocation3], %s564_s4 }
 0x156   : > { %975 = dma.done.wait (!%p777_p8), %s565_s28, 2048  }
 0x157   : > { %977 = vsyncadd (!%p777_p8), %s565_s28, 4294965248  ;;  %s573_s11 = sand.u32 1, %s984_s12   ;;  %p780_p9 = pnand %p783_p6, %p1168_p1 }
 0x158   : > { %s574_s5 = scalar_lea.sflag [#allocation5], %s573_s11 }
 0x159   : > { %979 = dma.done.wait (!%p780_p9), %s574_s5, 32  }
 0x15a   : > { %981 = vsyncadd (!%p780_p9), %s574_s5, 4294967264  ;;  %s20_s22 = sadd.s32 1, %s1024_s22   ;;  %s1423_s6 = smov %s1149_s15 }
 0x15b   : > { %p17_p0 = scmp.ge.s32.totalorder %s20_s22, 6   ;;  %s1424_s9 = sld [smem:[#allocation9_spill]] }
 0x15c   : > { %s1425_s12 = smov %s988_s13  ;;  %s1426_s13 = smov %s992_s14 }
 0x15d   : > { %s1427_s14 = smov %s1152_s3  ;;  %s1428_s15 = smov %s1000_s16 }
 0x15e   : > { %s1429_s16 = smov %s1004_s17  ;;  %s1430_s17 = smov %s1423_s6 }
 0x15f   : > { %s1431_s18 = smov %s1016_s20  ;;  %s1432_s19 = smov %s1020_s21 }
 0x160   : > { %s1433_s20 = smov %s1436_s25  ;;  %19 = sbr.rel (!%p17_p0) target bundleno = 11 (0xb), region = 80 }
 0x161   : > { %s1434_s21 = smov %s1424_s9 }
 0x167   :  { %579 = vsyncpa [#allocation3], 1 }
 0x168   :  { %581 = vsyncpa [#allocation3 + $0x1], 1 }
 0x169   :  { %582 = vsyncpa [#allocation5], 1 }
 0x16a   :  { %584 = vsyncpa [#allocation5 + $0x1], 1 }

</bundles_post_ra>
